<compile_context>
chip_gen: v5e
topology: v5e:2x2
jax: 0.10.0
libtpu: 0.0.40
codegen_flags: <defaults>
</compile_context>

<pallas_src>
import functools

import jax
import jax.numpy as jnp
from jax.experimental import pallas as pl
from jax.experimental.pallas import tpu as pltpu

_LANES = 128
_SUBLANES = 8
_MAX_BLOCK_ROWS = 1024  # (1024, 128) f32 = 512 KiB per input block


def _charbonnier_kernel(x_ref, y_ref, acc_ref, *, eps2):
    """Fold sqrt((x-y)^2 + eps^2) of one (block_rows, 128) tile into a resident
    (8, 128) partial-sum accumulator (one accumulator per outer-axis shard)."""
    # Inner ("arbitrary") grid axis is the reduction axis for this shard.
    @pl.when(pl.program_id(1) == 0)
    def _init():
        acc_ref[...] = jnp.zeros_like(acc_ref)

    diff = x_ref[...].astype(jnp.float32) - y_ref[...].astype(jnp.float32)
    val = jnp.sqrt(diff * diff + jnp.float32(eps2))
    # Pure-VPU fold: (block_rows, 128) -> (block_rows//8, 8, 128) -> sum axis 0.
    acc_ref[...] += val.reshape(-1, _SUBLANES, _LANES).sum(axis=0)


def _tail_sum(xt, yt, eps2):
    d = xt.astype(jnp.float32) - yt.astype(jnp.float32)
    return jnp.sum(jnp.sqrt(d * d + jnp.float32(eps2)), dtype=jnp.float32)


def charbonnier_loss(x, y, eps=1e-3):
    """Pallas TPU implementation of CharbonnierLoss.forward(x, y)."""
    assert x.shape == y.shape, "x and y must have the same shape"
    n_valid = int(x.size)
    eps2 = float(eps) * float(eps)

    xf = x.reshape(-1)
    yf = y.reshape(-1)

    lane_rows = n_valid // _LANES        # number of complete 128-lane rows
    lane_aligned = lane_rows * _LANES    # elements covered by those rows

    total = jnp.float32(0.0)

    if lane_rows >= _SUBLANES:
        if lane_aligned == n_valid:
            # Free reshape (contiguous bitcast) -- no extra HBM traffic.
            x2 = xf.reshape(lane_rows, _LANES)
            y2 = yf.reshape(lane_rows, _LANES)
        else:
            # Rare: total size not a multiple of 128 -> one prefix copy.
            x2 = xf[:lane_aligned].reshape(lane_rows, _LANES)
            y2 = yf[:lane_aligned].reshape(lane_rows, _LANES)

        block_rows = min(_MAX_BLOCK_ROWS, (lane_rows // _SUBLANES) * _SUBLANES)
        num_tiles = lane_rows // block_rows
        num_shards = 2 if num_tiles >= 2 else 1  # v7x: one per TensorCore
        tiles_per_shard = num_tiles // num_shards
        kernel_rows = num_shards * tiles_per_shard * block_rows

        kernel = functools.partial(_charbonnier_kernel, eps2=eps2)
        partials = pl.pallas_call(
            kernel,
            out_shape=jax.ShapeDtypeStruct(
                (num_shards * _SUBLANES, _LANES), jnp.float32),
            grid_spec=pltpu.PrefetchScalarGridSpec(
                num_scalar_prefetch=0,
                grid=(num_shards, tiles_per_shard),
                in_specs=[
                    pl.BlockSpec((block_rows, _LANES),
                                 lambda c, i: (c * tiles_per_shard + i, 0)),
                    pl.BlockSpec((block_rows, _LANES),
                                 lambda c, i: (c * tiles_per_shard + i, 0)),
                ],
                out_specs=pl.BlockSpec((_SUBLANES, _LANES),
                                       lambda c, i: (c, 0)),
            ),
            compiler_params=pltpu.CompilerParams(
                dimension_semantics=("parallel", "arbitrary"),
            ),
        )(x2, y2)
        total = total + jnp.sum(partials, dtype=jnp.float32)

        # Row remainder not covered by the grid (< 2 * block_rows rows): plain jnp.
        if kernel_rows < lane_rows:
            total = total + _tail_sum(x2[kernel_rows:], y2[kernel_rows:], eps2)

        scalar_tail_start = lane_aligned
    else:
        # Tiny input: not even one (8, 128) tile -> compute fully in jnp.
        scalar_tail_start = 0

    # Trailing elements past the last complete 128-lane row (< 128 of them).
    if scalar_tail_start < n_valid:
        total = total + _tail_sum(xf[scalar_tail_start:], yf[scalar_tail_start:], eps2)

    # Note: for n_valid > 2^24 the f32 representation of the count is inexact,
    # matching framework mean semantics; divide stays in the wrapper (exact int here).
    return total / n_valid


if __name__ == "__main__":
    key = jax.random.PRNGKey(0)
    kx, ky = jax.random.split(key)
    # NCHW, matching the PyTorch convention.
    shape = (2, 4, 16, 16)
    x = jax.random.normal(kx, shape, dtype=jnp.float32)
    y = jax.random.normal(ky, shape, dtype=jnp.float32)

    loss = jax.block_until_ready(charbonnier_loss(x, y, eps=1e-3))

    # Reference check (plain JAX) for correctness.
    diff = x - y
    ref = jnp.mean(jnp.sqrt(diff * diff + 1e-3 * 1e-3))
    assert jnp.allclose(loss, ref, rtol=1e-5, atol=1e-5), (loss, ref)

    print("KERNEL_OK")
</pallas_src>

<mosaic_0001>
module attributes {stable_mosaic.version = 11 : i64} {
  func.func @_charbonnier_kernel(%arg0: i32, %arg1: i32, %arg2: memref<16x128xf32, #tpu.memory_space<vmem>>, %arg3: memref<16x128xf32, #tpu.memory_space<vmem>>, %arg4: memref<8x128xf32, #tpu.memory_space<vmem>>) attributes {dimension_semantics = [#tpu.dimension_semantics<parallel>, #tpu.dimension_semantics<arbitrary>], iteration_bounds = array<i64: 1, 1>, scalar_prefetch = 0 : i64, scratch_operands = 0 : i64, tpu.core_type = #tpu.core_type<tc>, window_params = [{transform_indices = @transform_0, window_bounds = array<i64: 16, 128>}, {transform_indices = @transform_1, window_bounds = array<i64: 16, 128>}, {transform_indices = @transform_2, window_bounds = array<i64: 8, 128>}]} {
    %c0_i32 = arith.constant 0 : i32
    %0 = arith.cmpi eq, %arg1, %c0_i32 : i32
    %1 = arith.extui %0 : i1 to i32
    %c0_i32_0 = arith.constant 0 : i32
    %2 = arith.cmpi ne, %1, %c0_i32_0 : i32
    scf.if %2 {
      %cst_9 = arith.constant 0.000000e+00 : f32
      %15 = vector.broadcast %cst_9 : f32 to vector<8x128xf32>
      %c0_10 = arith.constant 0 : index
      %c0_11 = arith.constant 0 : index
      %16 = vector.load %arg4[%c0_10, %c0_11] : memref<8x128xf32, #tpu.memory_space<vmem>>, vector<8x128xf32>
      tpu.vector_store %arg4[%c0_10, %c0_11], %15 {strides = array<i32>} : memref<8x128xf32, #tpu.memory_space<vmem>>, vector<8x128xf32>,
    } else {
    }
    %c0 = arith.constant 0 : index
    %c0_1 = arith.constant 0 : index
    %3 = vector.load %arg2[%c0, %c0_1] : memref<16x128xf32, #tpu.memory_space<vmem>>, vector<16x128xf32>
    %c0_2 = arith.constant 0 : index
    %c0_3 = arith.constant 0 : index
    %4 = vector.load %arg3[%c0_2, %c0_3] : memref<16x128xf32, #tpu.memory_space<vmem>>, vector<16x128xf32>
    %5 = arith.subf %3, %4 : vector<16x128xf32>
    %6 = arith.mulf %5, %5 : vector<16x128xf32>
    %cst = arith.constant 9.99999997E-7 : f32
    %7 = vector.broadcast %cst : f32 to vector<16x128xf32>
    %8 = arith.addf %6, %7 : vector<16x128xf32>
    %9 = math.sqrt %8 : vector<16x128xf32>
    %c0_4 = arith.constant 0 : index
    %c0_5 = arith.constant 0 : index
    %10 = vector.load %arg4[%c0_4, %c0_5] : memref<8x128xf32, #tpu.memory_space<vmem>>, vector<8x128xf32>
    %11 = vector.shape_cast %9 : vector<16x128xf32> to vector<2x8x128xf32>
    %cst_6 = arith.constant dense<0.000000e+00> : vector<8x128xf32>
    %12 = vector.multi_reduction <add>, %11, %cst_6 [0] : vector<2x8x128xf32> to vector<8x128xf32>
    %13 = arith.addf %10, %12 : vector<8x128xf32>
    %c0_7 = arith.constant 0 : index
    %c0_8 = arith.constant 0 : index
    %14 = vector.load %arg4[%c0_7, %c0_8] : memref<8x128xf32, #tpu.memory_space<vmem>>, vector<8x128xf32>
    tpu.vector_store %arg4[%c0_7, %c0_8], %13 {strides = array<i32>} : memref<8x128xf32, #tpu.memory_space<vmem>>, vector<8x128xf32>,
    return
  }
  func.func @transform_0(%arg0: i32, %arg1: i32) -> (i32, i32) {
    %c1_i32 = arith.constant 1 : i32
    %0 = arith.muli %arg0, %c1_i32 : i32
    %1 = arith.addi %0, %arg1 : i32
    %c0_i32 = arith.constant 0 : i32
    %c0_i32_0 = arith.constant 0 : i32
    return %1, %c0_i32 : i32, i32
  }
  func.func @transform_1(%arg0: i32, %arg1: i32) -> (i32, i32) {
    %c1_i32 = arith.constant 1 : i32
    %0 = arith.muli %arg0, %c1_i32 : i32
    %1 = arith.addi %0, %arg1 : i32
    %c0_i32 = arith.constant 0 : i32
    %c0_i32_0 = arith.constant 0 : i32
    return %1, %c0_i32 : i32, i32
  }
  func.func @transform_2(%arg0: i32, %arg1: i32) -> (i32, i32) {
    %c0_i32 = arith.constant 0 : i32
    %c0_i32_0 = arith.constant 0 : i32
    return %arg0, %c0_i32 : i32, i32
  }
}

</mosaic_0001>

<bundles_post_ra>
// kernel: tpu_custom_call.1
= control target key start
LH: loop header
LB: loop body
LE: loop exit
PB: predicated region body
PF: predicated region fallthrough
CT: control target
= control target key end

     0   :  { %7 = vsyncpa [#allocation3], 0  ;;  %s234_s0 = inlined_call_operand.hbm [shape: f32[16,128], index: 0, kind: input, shape index: {}]   ;;  %s235_s1 = inlined_call_operand.hbm [shape: f32[16,128], index: 1, kind: input, shape index: {}]   ;;  %s236_s2 = inlined_call_operand.hbm [shape: f32[8,128], index: 2, kind: output, shape index: {}]  }
   0x1   :  { %8 = vsyncpa [#allocation6], 0 }
   0x2   :  { %9 = vsyncpa [#allocation4], 0  ;;  %s18_s11 = sshll.u32 %s234_s0, 4  ;;  %s205_s12 = smov [#allocation2]   ;;  %s19_s11 = int_to_ptr.hbm [resolvable:$true] %s18_s11 }
   0x3   :  { %s20_s13 = sshll.u32 %s205_s12, 4  ;;  %s35_s16 = sshll.u32 %s235_s1, 4  ;;  %s21_s13 = int_to_ptr.vmem [resolvable:$true] %s20_s13  ;;  %s36_s16 = int_to_ptr.hbm [resolvable:$true] %s35_s16 }
   0x4   :  { %s206_s17 = smov 128   ;;  %s207_s18 = smov 8  }
   0x5   :  { %26 = dma.hbm_to_vmem [thread:$0]  %s19_s11, 256, %s21_s13, [#allocation3], %s206_s17, %s206_s17, %s207_s18  }
   0x6   :  { %s208_s19 = smov [#allocation5]  }
   0x7   :  { %s37_s20 = sshll.u32 %s208_s19, 4  ;;  %s38_s20 = int_to_ptr.vmem [resolvable:$true] %s37_s20 }
   0x8   :  { %43 = dma.hbm_to_vmem [thread:$0]  %s36_s16, 256, %s38_s20, [#allocation6], %s206_s17, %s206_s17, %s207_s18  }
   0x9   :  { %199 = dma.done.wait [#allocation3], 256  }
   0xa   :  { %200 = vsyncadd [#allocation3], 4294967040 }
   0xb   :  { %201 = dma.done.wait [#allocation6], 256  }
   0xc   :  { %202 = vsyncadd [#allocation6], 4294967040  ;;  %v61_v0 = vld [vmem:[#allocation2] sm:$0xff]  ;;  %v62_v1 = vld [vmem:[#allocation2 + $0x8] sm:$0xff]  ;;  %s209_s0 = smov [#allocation7]   ;;  %s106_s23 = sshll.u32 %s236_s2, 4  ;;  %s107_s23 = int_to_ptr.hbm [resolvable:$true] %s106_s23 }
   0xd   :  { %v63_v2 = vld [vmem:[#allocation5] sm:$0xff]  ;;  %v64_v3 = vld [vmem:[#allocation5 + $0x8] sm:$0xff]  ;;  %s104_s1 = sshll.u32 %s209_s0, 4  ;;  %s105_s1 = int_to_ptr.vmem [resolvable:$true] %s104_s1 }
   0xe   :  { %v65_v4 = vsub.f32 %v61_v0, %v63_v2  ;;  %v66_v5 = vsub.f32 %v62_v1, %v64_v3 }
  0x10   :  { %v67_v6 = vmul.f32 %v65_v4, %v65_v4  ;;  %v68_v7 = vmul.f32 %v66_v5, %v66_v5 }
  0x12   :  { %v69_v8 = vadd.f32 1e-06, %v67_v6  ;;  %v70_v9 = vadd.f32 1e-06, %v68_v7 }
  0x14   :  { %123 = vrsqrt.f32 %v69_v8  ;;  %vm78_vm0 = vcmp.eq.f32.partialorder %v69_v8, inf  ;;  %v81_v21 = vand.u32 2147483648, %v69_v8  ;;  %vm80_vm1 = vcmp.eq.f32.partialorder %v69_v8, 0.0 }
  0x15   :  { %125 = vrsqrt.f32 %v70_v9  ;;  %vm90_vm2 = vcmp.eq.f32.partialorder %v70_v9, inf  ;;  %v93_v24 = vand.u32 2147483648, %v70_v9  ;;  %vm92_vm3 = vcmp.eq.f32.partialorder %v70_v9, 0.0 }
  0x1a   :  { %v124_v10 = vpop.eup %123 }
  0x1b   :  { %v126_v11 = vpop.eup %125  ;;  %v72_v12 = vmul.f32 %v124_v10, %v69_v8 }
  0x1c   :  { %v84_v13 = vmul.f32 %v126_v11, %v70_v9 }
  0x1d   :  { %v73_v14 = vmul.f32 %v124_v10, %v72_v12 }
  0x1e   :  { %v85_v15 = vmul.f32 %v126_v11, %v84_v13 }
  0x1f   :  { %v74_v16 = vmul.f32 0.5, %v73_v14 }
  0x20   :  { %v86_v17 = vmul.f32 0.5, %v85_v15 }
  0x21   :  { %v75_v18 = vsub.f32 1.5, %v74_v16 }
  0x22   :  { %v87_v19 = vsub.f32 1.5, %v86_v17 }
  0x23   :  { %v76_v20 = vmul.f32 %v124_v10, %v75_v18 }
  0x24   :  { %v88_v22 = vmul.f32 %v126_v11, %v87_v19 }
  0x25   :  { %v77_v23 = vmul.f32 %v76_v20, %v69_v8 }
  0x26   :  { %v89_v25 = vmul.f32 %v88_v22, %v70_v9 }
  0x27   :  { %v79_v26 = vsel %vm78_vm0, %v69_v8, %v77_v23 }
  0x28   :  { %v82_v27 = vsel %vm80_vm1, %v81_v21, %v79_v26  ;;  %v91_v28 = vsel %vm90_vm2, %v70_v9, %v89_v25 }
  0x29   :  { %v94_v29 = vsel %vm92_vm3, %v93_v24, %v91_v28 }
  0x2a   :  { %v96_v30 = vadd.f32 %v94_v29, %v82_v27 }
  0x2c   :  { %98 = vst [vmem:[#allocation7] sm:$0xff] %v96_v30 }
  0x2d   :  { %109 = dma.vmem_to_hbm [thread:$0]  %s105_s1, 128, %s107_s23, [#allocation4]  }
  0x2e   :  { %203 = dma.done.wait [#allocation4], 128  }
  0x2f   :  { %204 = vsyncadd [#allocation4], 4294967168 }
  0x30   :  { %114 = vsyncpa [#allocation3], 1 }
  0x31   :  { %115 = vsyncpa [#allocation6], 1 }
  0x32   :  { %116 = vsyncpa [#allocation4], 1 }

</bundles_post_ra>
